<compile_context>
chip_gen: v7x
topology: tpu7x:2x2x1
jax: 0.10.0
libtpu: 0.0.40
codegen_flags: <defaults>
</compile_context>

<pallas_src>
import functools

import jax
import jax.numpy as jnp
from jax.experimental import pallas as pl
from jax.experimental.pallas import tpu as pltpu

LN_EPS = 1e-12  # BERT LayerNorm default


def _gelu(x):
    # TODO(synk): HF BERT's default hidden_act="gelu" is the exact erf GELU; the
    # tanh approximation runs on the TPU EUP and differs by < ~1e-3 pre-LN.
    c = 0.7978845608028654  # sqrt(2/pi)
    return 0.5 * x * (1.0 + jnp.tanh(c * (x + 0.044715 * x * x * x)))


def _round_up(x, m):
    return ((x + m - 1) // m) * m


def _tpu_defaults():
    """(row tile tm, vmem_limit_bytes) tuned per TPU generation (perf review)."""
    kind = ""
    try:
        kind = jax.devices()[0].device_kind.lower()
    except Exception:  # non-TPU backends / interpret mode
        pass
    if "v6" in kind:   # 918 TF/s vs ~1.4 TB/s -> needs ~650 FLOPs per weight byte
        return 1024, 100 * 1024 * 1024
    if "v5" in kind:   # lower compute roofline; 128 MiB VMEM available
        return 512, 100 * 1024 * 1024
    # v7x (64 MiB physical VMEM, 2 TCs share HBM) and unknown chips.
    return 512, 48 * 1024 * 1024


def _pick_vocab_tile(v_pad, target):
    """Largest multiple of 128 <= target that divides v_pad (v_pad % 128 == 0)."""
    t = min(_round_up(target, 128), v_pad)
    t = (t // 128) * 128
    while t > 128 and v_pad % t:
        t -= 128
    return t


def _lm_head_kernel(x_ref, wd_ref, bd_ref, g_ref, beta_ref,
                    wdec_ref, bias_ref, o_ref, h_scratch):
    j = pl.program_id(1)

    # The transform (dense + gelu + layernorm) depends only on the row tile i.
    # j is the innermost ("arbitrary") axis, so compute it once per row tile
    # (at j == 0) and keep the bf16 result in VMEM scratch for the vocab sweep.
    @pl.when(j == 0)
    def _():
        h = jnp.dot(x_ref[...], wd_ref[...],              # bf16 x bf16 -> f32 acc
                    preferred_element_type=jnp.float32) + bd_ref[...]
        h = _gelu(h)
        mean = jnp.mean(h, axis=-1, keepdims=True)
        var = jnp.mean((h - mean) ** 2, axis=-1, keepdims=True)
        h = (h - mean) * jax.lax.rsqrt(var + LN_EPS)
        h = h * g_ref[...] + beta_ref[...]
        h_scratch[...] = h.astype(h_scratch.dtype)        # bf16 feed for the MXU

    # bf16 x bf16 -> f32 accumulate on the MXU; bias added in f32.
    # Per-step bias add / astype ride in otherwise-idle VPU slots (not the
    # binding unit) -- intentionally left as-is.
    out = jnp.dot(h_scratch[...], wdec_ref[...],
                  preferred_element_type=jnp.float32) + bias_ref[...]
    o_ref[...] = out.astype(o_ref.dtype)


def prepare_lm_head_params(params, *, vocab_align=512):
    """One-time weight prep (transpose / bf16 cast / vocab pad).

    Doing this per forward call would add 2-3 extra HBM round trips over the
    dominant H x V decoder weight. Call once, reuse the result every step.
    Returns (prepared_dict, vocab_size).
    """
    H = params["dense_w"].shape[0]
    V = params["dec_b"].shape[0]
    v_pad = _round_up(V, vocab_align)
    prep = {
        # nn.Linear weights are [out, in]; pre-transpose so lanes = output dim.
        "wd_t": params["dense_w"].T.astype(jnp.bfloat16),               # [H, H]
        "bd": params["dense_b"].reshape(1, H).astype(jnp.float32),
        "ln_g": params["ln_g"].reshape(1, H).astype(jnp.float32),
        "ln_b": params["ln_b"].reshape(1, H).astype(jnp.float32),
        # Decoder weight lives in HBM as bf16 (halves the dominant stream);
        # vocab padded to the tile multiple for lane-dense unmasked stores.
        "wdec_t": jnp.pad(params["dec_w"].T.astype(jnp.bfloat16),       # [H, v_pad]
                          ((0, 0), (0, v_pad - V))),
        "dec_b": jnp.pad(params["dec_b"].reshape(1, V).astype(jnp.float32),
                         ((0, 0), (0, v_pad - V))),
    }
    # TODO(synk): on v5e/v6e an int8 decoder weight (per-channel scales) would
    # halve the weight stream again; do NOT port that to v7x (fp8 MXU, no int8).
    return prep, V


@functools.partial(
    jax.jit,
    static_argnames=("vocab_size", "tm", "tn", "logits_dtype", "slice_to_vocab"))
def bert_lm_prediction_head(hidden_states, prep, *, vocab_size, tm=None, tn=512,
                            logits_dtype=jnp.bfloat16, slice_to_vocab=True):
    """hidden_states: [B, S, H]. Returns logits [B, S, V] (bf16 by default)."""
    B, S, H = hidden_states.shape
    M = B * S
    v_pad = prep["wdec_t"].shape[1]

    tm_default, vmem_limit = _tpu_defaults()
    tm = tm_default if tm is None else tm

    # Effective tiles: shrink to the (16/128-aligned) problem size at toy shapes,
    # cap at tm/tn for big problems so VMEM stays bounded. Keep M/tm >= 2 where
    # possible so the 'parallel' i axis feeds both TensorCores on v7x.
    tm_eff = min(tm, _round_up(M, 16))
    m_pad = _round_up(M, tm_eff)
    tn_eff = _pick_vocab_tile(v_pad, tn)

    x2d = hidden_states.reshape(M, H).astype(jnp.bfloat16)
    if m_pad != M:
        x2d = jnp.pad(x2d, ((0, m_pad - M), (0, 0)))

    grid = (m_pad // tm_eff, v_pad // tn_eff)  # (row tiles, vocab tiles)

    out2d = pl.pallas_call(
        _lm_head_kernel,
        out_shape=jax.ShapeDtypeStruct((m_pad, v_pad), logits_dtype),
        grid_spec=pltpu.PrefetchScalarGridSpec(
            num_scalar_prefetch=0,
            grid=grid,
            in_specs=[
                pl.BlockSpec((tm_eff, H), lambda i, j: (i, 0)),   # x row tile (bf16)
                pl.BlockSpec((H, H), lambda i, j: (0, 0)),        # dense W^T (bf16)
                pl.BlockSpec((1, H), lambda i, j: (0, 0)),        # dense bias (f32)
                pl.BlockSpec((1, H), lambda i, j: (0, 0)),        # LN gamma
                pl.BlockSpec((1, H), lambda i, j: (0, 0)),        # LN beta
                pl.BlockSpec((H, tn_eff), lambda i, j: (0, j)),   # decoder W^T tile (bf16)
                pl.BlockSpec((1, tn_eff), lambda i, j: (0, j)),   # decoder bias tile
            ],
            out_specs=pl.BlockSpec((tm_eff, tn_eff), lambda i, j: (i, j)),
            scratch_shapes=[pltpu.VMEM((tm_eff, H), jnp.bfloat16)],
        ),
        compiler_params=pltpu.CompilerParams(
            # i (row tiles) is sharded across TensorCores; the vocab axis must
            # stay "arbitrary" because h_scratch is filled at j == 0.
            dimension_semantics=("parallel", "arbitrary"),
            vmem_limit_bytes=vmem_limit),
    )(x2d, prep["wd_t"], prep["bd"], prep["ln_g"], prep["ln_b"],
      prep["wdec_t"], prep["dec_b"])

    if m_pad != M:
        out2d = out2d[:M]
    if slice_to_vocab and v_pad != vocab_size:
        # TODO(synk): for very large vocabs prefer slice_to_vocab=False and mask
        # the padded columns in the loss; this slice materializes an M x V copy.
        out2d = out2d[:, :vocab_size]
    return out2d.reshape(B, S, -1)


def _reference(hidden_states, params):
    """Pure-JAX f32 reference of the module forward."""
    wd, bd, g, b, wdec, dec_b = (
        params["dense_w"], params["dense_b"], params["ln_g"], params["ln_b"],
        params["dec_w"], params["dec_b"])
    h = hidden_states @ wd.T + bd
    h = _gelu(h)
    mean = jnp.mean(h, axis=-1, keepdims=True)
    var = jnp.mean((h - mean) ** 2, axis=-1, keepdims=True)
    h = (h - mean) * jax.lax.rsqrt(var + LN_EPS) * g + b
    return h @ wdec.T + dec_b


if __name__ == "__main__":
    B, S, H, V = 2, 8, 128, 512  # small synthetic config

    key = jax.random.PRNGKey(0)
    kx, k1, k2, k3 = jax.random.split(key, 4)
    hidden_states = jax.random.normal(kx, (B, S, H), dtype=jnp.float32)

    params = {
        "dense_w": 0.02 * jax.random.normal(k1, (H, H), dtype=jnp.float32),
        "dense_b": jnp.zeros((H,), jnp.float32),
        "ln_g": jnp.ones((H,), jnp.float32),
        "ln_b": jnp.zeros((H,), jnp.float32),
        "dec_w": 0.02 * jax.random.normal(k2, (V, H), dtype=jnp.float32),
        "dec_b": 0.1 * jax.random.normal(k3, (V,), dtype=jnp.float32),
    }

    # One-time weight prep (transpose / bf16 cast / vocab pad), then forward.
    prep, vocab = prepare_lm_head_params(params)
    out = bert_lm_prediction_head(hidden_states, prep, vocab_size=vocab)
    out = jax.block_until_ready(out)

    ref = _reference(hidden_states, params)
    assert out.shape == (B, S, V), out.shape
    # Fully bf16 data path (f32 MXU accumulate): compare with bf16-level tolerance.
    out32 = out.astype(jnp.float32)
    assert jnp.allclose(out32, ref, atol=5e-2, rtol=5e-2), float(
        jnp.max(jnp.abs(out32 - ref)))
    print("KERNEL_OK")
</pallas_src>

<mosaic_0001>
module attributes {stable_mosaic.version = 11 : i64} {
  func.func @_lm_head_kernel(%arg0: i32, %arg1: i32, %arg2: memref<16x128xbf16, #tpu.memory_space<vmem>>, %arg3: memref<128x128xbf16, #tpu.memory_space<vmem>>, %arg4: memref<1x128xf32, #tpu.memory_space<vmem>>, %arg5: memref<1x128xf32, #tpu.memory_space<vmem>>, %arg6: memref<1x128xf32, #tpu.memory_space<vmem>>, %arg7: memref<128x512xbf16, #tpu.memory_space<vmem>>, %arg8: memref<1x512xf32, #tpu.memory_space<vmem>>, %arg9: memref<16x512xbf16, #tpu.memory_space<vmem>>, %arg10: memref<16x128xbf16, #tpu.memory_space<vmem>>) attributes {dimension_semantics = [#tpu.dimension_semantics<parallel>, #tpu.dimension_semantics<arbitrary>], iteration_bounds = array<i64: 1, 1>, scalar_prefetch = 0 : i64, scratch_operands = 1 : i64, tpu.core_type = #tpu.core_type<tc>, window_params = [{transform_indices = @transform_0, window_bounds = array<i64: 16, 128>}, {pipeline_mode = #tpu.pipeline_mode<synchronous>, transform_indices = @transform_1, window_bounds = array<i64: 128, 128>}, {pipeline_mode = #tpu.pipeline_mode<synchronous>, transform_indices = @transform_2, window_bounds = array<i64: 1, 128>}, {pipeline_mode = #tpu.pipeline_mode<synchronous>, transform_indices = @transform_3, window_bounds = array<i64: 1, 128>}, {pipeline_mode = #tpu.pipeline_mode<synchronous>, transform_indices = @transform_4, window_bounds = array<i64: 1, 128>}, {transform_indices = @transform_5, window_bounds = array<i64: 128, 512>}, {transform_indices = @transform_6, window_bounds = array<i64: 1, 512>}, {transform_indices = @transform_7, window_bounds = array<i64: 16, 512>}]} {
    %c0_i32 = arith.constant 0 : i32
    %0 = arith.cmpi eq, %arg1, %c0_i32 : i32
    %1 = arith.extui %0 : i1 to i32
    %c0_i32_0 = arith.constant 0 : i32
    %2 = arith.cmpi ne, %1, %c0_i32_0 : i32
    scf.if %2 {
      %c0_8 = arith.constant 0 : index
      %c0_9 = arith.constant 0 : index
      %11 = vector.load %arg2[%c0_8, %c0_9] : memref<16x128xbf16, #tpu.memory_space<vmem>>, vector<16x128xbf16>
      %c0_10 = arith.constant 0 : index
      %c0_11 = arith.constant 0 : index
      %12 = vector.load %arg3[%c0_10, %c0_11] : memref<128x128xbf16, #tpu.memory_space<vmem>>, vector<128x128xbf16>
      %cst_12 = arith.constant dense<0.000000e+00> : vector<16x128xf32>
      %13 = tpu.matmul %11, %12, %cst_12 {dimension_numbers = #tpu.dot_dimension_numbers<[1], [0], [0], [1], [0, 0, 1, 1], [], []>} : vector<16x128xbf16>, vector<128x128xbf16>, vector<16x128xf32> -> vector<16x128xf32>
      %c0_13 = arith.constant 0 : index
      %c0_14 = arith.constant 0 : index
      %14 = vector.load %arg4[%c0_13, %c0_14] : memref<1x128xf32, #tpu.memory_space<vmem>>, vector<1x128xf32>
      %15 = vector.broadcast %14 : vector<1x128xf32> to vector<16x128xf32>
      %16 = arith.addf %13, %15 : vector<16x128xf32>
      %cst_15 = arith.constant 5.000000e-01 : f32
      %17 = vector.broadcast %cst_15 : f32 to vector<16x128xf32>
      %18 = arith.mulf %17, %16 : vector<16x128xf32>
      %cst_16 = arith.constant 4.471500e-02 : f32
      %19 = vector.broadcast %cst_16 : f32 to vector<16x128xf32>
      %20 = arith.mulf %19, %16 : vector<16x128xf32>
      %21 = arith.mulf %20, %16 : vector<16x128xf32>
      %22 = arith.mulf %21, %16 : vector<16x128xf32>
      %23 = arith.addf %16, %22 : vector<16x128xf32>
      %cst_17 = arith.constant 0.797884583 : f32
      %24 = vector.broadcast %cst_17 : f32 to vector<16x128xf32>
      %25 = arith.mulf %24, %23 : vector<16x128xf32>
      %26 = math.tanh %25 : vector<16x128xf32>
      %cst_18 = arith.constant 1.000000e+00 : f32
      %27 = vector.broadcast %cst_18 : f32 to vector<16x128xf32>
      %28 = arith.addf %27, %26 : vector<16x128xf32>
      %29 = arith.mulf %18, %28 : vector<16x128xf32>
      %cst_19 = arith.constant dense<0.000000e+00> : vector<16xf32>
      %30 = vector.multi_reduction <add>, %29, %cst_19 [1] : vector<16x128xf32> to vector<16xf32>
      %31 = vector.shape_cast %30 : vector<16xf32> to vector<16x1xf32>
      %cst_20 = arith.constant 1.280000e+02 : f32
      %32 = vector.broadcast %cst_20 : f32 to vector<16x1xf32>
      %33 = arith.divf %31, %32 : vector<16x1xf32>
      %34 = vector.broadcast %33 : vector<16x1xf32> to vector<16x128xf32>
      %35 = arith.subf %29, %34 : vector<16x128xf32>
      %36 = arith.mulf %35, %35 : vector<16x128xf32>
      %cst_21 = arith.constant dense<0.000000e+00> : vector<16xf32>
      %37 = vector.multi_reduction <add>, %36, %cst_21 [1] : vector<16x128xf32> to vector<16xf32>
      %38 = vector.shape_cast %37 : vector<16xf32> to vector<16x1xf32>
      %cst_22 = arith.constant 1.280000e+02 : f32
      %39 = vector.broadcast %cst_22 : f32 to vector<16x1xf32>
      %40 = arith.divf %38, %39 : vector<16x1xf32>
      %41 = vector.broadcast %33 : vector<16x1xf32> to vector<16x128xf32>
      %42 = arith.subf %29, %41 : vector<16x128xf32>
      %cst_23 = arith.constant 9.99999996E-13 : f32
      %43 = vector.broadcast %cst_23 : f32 to vector<16x1xf32>
      %44 = arith.addf %40, %43 : vector<16x1xf32>
      %45 = math.rsqrt %44 : vector<16x1xf32>
      %46 = vector.broadcast %45 : vector<16x1xf32> to vector<16x128xf32>
      %47 = arith.mulf %42, %46 : vector<16x128xf32>
      %c0_24 = arith.constant 0 : index
      %c0_25 = arith.constant 0 : index
      %48 = vector.load %arg5[%c0_24, %c0_25] : memref<1x128xf32, #tpu.memory_space<vmem>>, vector<1x128xf32>
      %49 = vector.broadcast %48 : vector<1x128xf32> to vector<16x128xf32>
      %50 = arith.mulf %47, %49 : vector<16x128xf32>
      %c0_26 = arith.constant 0 : index
      %c0_27 = arith.constant 0 : index
      %51 = vector.load %arg6[%c0_26, %c0_27] : memref<1x128xf32, #tpu.memory_space<vmem>>, vector<1x128xf32>
      %52 = vector.broadcast %51 : vector<1x128xf32> to vector<16x128xf32>
      %53 = arith.addf %50, %52 : vector<16x128xf32>
      %54 = arith.truncf %53 : vector<16x128xf32> to vector<16x128xbf16>
      %c0_28 = arith.constant 0 : index
      %c0_29 = arith.constant 0 : index
      %55 = vector.load %arg10[%c0_28, %c0_29] : memref<16x128xbf16, #tpu.memory_space<vmem>>, vector<16x128xbf16>
      tpu.vector_store %arg10[%c0_28, %c0_29], %54 {strides = array<i32>} : memref<16x128xbf16, #tpu.memory_space<vmem>>, vector<16x128xbf16>,
    } else {
    }
    %c0 = arith.constant 0 : index
    %c0_1 = arith.constant 0 : index
    %3 = vector.load %arg10[%c0, %c0_1] : memref<16x128xbf16, #tpu.memory_space<vmem>>, vector<16x128xbf16>
    %c0_2 = arith.constant 0 : index
    %c0_3 = arith.constant 0 : index
    %4 = vector.load %arg7[%c0_2, %c0_3] : memref<128x512xbf16, #tpu.memory_space<vmem>>, vector<128x512xbf16>
    %cst = arith.constant dense<0.000000e+00> : vector<16x512xf32>
    %5 = tpu.matmul %3, %4, %cst {dimension_numbers = #tpu.dot_dimension_numbers<[1], [0], [0], [1], [0, 0, 1, 1], [], []>} : vector<16x128xbf16>, vector<128x512xbf16>, vector<16x512xf32> -> vector<16x512xf32>
    %c0_4 = arith.constant 0 : index
    %c0_5 = arith.constant 0 : index
    %6 = vector.load %arg8[%c0_4, %c0_5] : memref<1x512xf32, #tpu.memory_space<vmem>>, vector<1x512xf32>
    %7 = vector.broadcast %6 : vector<1x512xf32> to vector<16x512xf32>
    %8 = arith.addf %5, %7 : vector<16x512xf32>
    %9 = arith.truncf %8 : vector<16x512xf32> to vector<16x512xbf16>
    %c0_6 = arith.constant 0 : index
    %c0_7 = arith.constant 0 : index
    %10 = vector.load %arg9[%c0_6, %c0_7] : memref<16x512xbf16, #tpu.memory_space<vmem>>, vector<16x512xbf16>
    tpu.vector_store %arg9[%c0_6, %c0_7], %9 {strides = array<i32>} : memref<16x512xbf16, #tpu.memory_space<vmem>>, vector<16x512xbf16>,
    return
  }
  func.func @transform_0(%arg0: i32, %arg1: i32) -> (i32, i32) {
    %c0_i32 = arith.constant 0 : i32
    %c0_i32_0 = arith.constant 0 : i32
    return %arg0, %c0_i32 : i32, i32
  }
  func.func @transform_1(%arg0: i32, %arg1: i32) -> (i32, i32) {
    %c0_i32 = arith.constant 0 : i32
    %c0_i32_0 = arith.constant 0 : i32
    %c0_i32_1 = arith.constant 0 : i32
    return %c0_i32, %c0_i32_0 : i32, i32
  }
  func.func @transform_2(%arg0: i32, %arg1: i32) -> (i32, i32) {
    %c0_i32 = arith.constant 0 : i32
    %c0_i32_0 = arith.constant 0 : i32
    %c0_i32_1 = arith.constant 0 : i32
    return %c0_i32, %c0_i32_0 : i32, i32
  }
  func.func @transform_3(%arg0: i32, %arg1: i32) -> (i32, i32) {
    %c0_i32 = arith.constant 0 : i32
    %c0_i32_0 = arith.constant 0 : i32
    %c0_i32_1 = arith.constant 0 : i32
    return %c0_i32, %c0_i32_0 : i32, i32
  }
  func.func @transform_4(%arg0: i32, %arg1: i32) -> (i32, i32) {
    %c0_i32 = arith.constant 0 : i32
    %c0_i32_0 = arith.constant 0 : i32
    %c0_i32_1 = arith.constant 0 : i32
    return %c0_i32, %c0_i32_0 : i32, i32
  }
  func.func @transform_5(%arg0: i32, %arg1: i32) -> (i32, i32) {
    %c0_i32 = arith.constant 0 : i32
    %c0_i32_0 = arith.constant 0 : i32
    return %c0_i32, %arg1 : i32, i32
  }
  func.func @transform_6(%arg0: i32, %arg1: i32) -> (i32, i32) {
    %c0_i32 = arith.constant 0 : i32
    %c0_i32_0 = arith.constant 0 : i32
    return %c0_i32, %arg1 : i32, i32
  }
  func.func @transform_7(%arg0: i32, %arg1: i32) -> (i32, i32) {
    %c0_i32 = arith.constant 0 : i32
    return %arg0, %arg1 : i32, i32
  }
}

</mosaic_0001>

<bundles_post_ra>
// kernel: bert_lm_prediction_head.1
= control target key start
LH: loop header
LB: loop body
LE: loop exit
PB: predicated region body
PF: predicated region fallthrough
CT: control target
= control target key end

     0   :  { %12 = vsyncpa [#allocation4], 0  ;;  %s933_s0 = inlined_call_operand.vmem [shape: bf16[16,128], index: 0, kind: input, shape index: {}]   ;;  %s934_s1 = inlined_call_operand.hbm [shape: bf16[128,128], index: 1, kind: input, shape index: {}]   ;;  %s935_s2 = inlined_call_operand.vmem [shape: f32[1,128], index: 2, kind: input, shape index: {}]   ;;  %s936_s3 = inlined_call_operand.vmem [shape: f32[1,128], index: 3, kind: input, shape index: {}]   ;;  %s937_s4 = inlined_call_operand.vmem [shape: f32[1,128], index: 4, kind: input, shape index: {}]   ;;  %s938_s5 = inlined_call_operand.hbm [shape: bf16[128,512], index: 5, kind: input, shape index: {}]   ;;  %s939_s6 = inlined_call_operand.vmem [shape: f32[1,512], index: 6, kind: input, shape index: {}]   ;;  %s940_s7 = inlined_call_operand.hbm [shape: bf16[16,512], index: 7, kind: output, shape index: {}]  }
   0x1   :  { %13 = vsyncpa [#allocation7], 0 }
   0x2   :  { %14 = vsyncpa [#allocation5], 0  ;;  %s816_s24 = smov [#allocation3]   ;;  %s744_s28 = scalar_lea.hbm %s934_s1, 1024 }
   0x3   :  { %s22_s25 = sshll.u32 %s816_s24, 4  ;;  %p745_p0 = scmp.ne.s32.totalorder %s934_s1, %s744_s28  ;;  %s23_s25 = int_to_ptr.vmem [resolvable:$true] %s22_s25 }
   0x4   :  { %p748_p1 = scmp.lt.u32.totalorder %s744_s28, %s934_s1 }
   0x6   :  { %p750_p2 = pnand %p748_p1, %p745_p0 }
   0x8   :  { %753 = shalt.err (!%p750_p2)
}
   0x9   :  { %s754_s10 = scalar_lea.vmem %s23_s25, 1024  ;;  %p759_p4 = scmp.lt.s32.totalorder %s23_s25, %s23_s25 }
   0xa   :  { %p755_p3 = scmp.ne.s32.totalorder %s23_s25, %s754_s10  ;;  %p760_p5 = scmp.lt.s32.totalorder %s754_s10, %s754_s10 }
   0xc   :  { %p761_p6 = por %p760_p5, %p759_p4 }
   0xe   :  { %p762_p7 = pnand %p761_p6, %p755_p3 }
  0x10   :  { %765 = shalt.err (!%p762_p7)
}
  0x11   :  { %s817_s11 = smov 64   ;;  %s818_s12 = smov 4  }
  0x12   :  { %28 = dma.hbm_to_vmem [thread:$0]  %s934_s1, 1024, %s23_s25, [#allocation4], %s817_s11, %s817_s11, %s818_s12  }
  0x13   :  { %s819_s15 = smov [#allocation6]   ;;  %s766_s19 = scalar_lea.hbm %s938_s5, 4096 }
  0x14   :  { %s40_s16 = sshll.u32 %s819_s15, 4  ;;  %p767_p8 = scmp.ne.s32.totalorder %s938_s5, %s766_s19  ;;  %s41_s16 = int_to_ptr.vmem [resolvable:$true] %s40_s16 }
  0x15   :  { %p770_p9 = scmp.lt.u32.totalorder %s766_s19, %s938_s5 }
  0x17   :  { %p772_p10 = pnand %p770_p9, %p767_p8 }
  0x19   :  { %775 = shalt.err (!%p772_p10)
}
  0x1a   :  { %s776_s24 = scalar_lea.vmem %s41_s16, 4096  ;;  %p781_p12 = scmp.lt.s32.totalorder %s41_s16, %s41_s16 }
  0x1b   :  { %p777_p11 = scmp.ne.s32.totalorder %s41_s16, %s776_s24  ;;  %p782_p13 = scmp.lt.s32.totalorder %s776_s24, %s776_s24 }
  0x1d   :  { %p783_p0 = por %p782_p13, %p781_p12 }
  0x1f   :  { %p784_p1 = pnand %p783_p0, %p777_p11 }
  0x21   :  { %787 = shalt.err (!%p784_p1)
}
  0x22   :  { %s820_s1 = smov 256   ;;  %s821_s25 = smov 16  }
  0x23   :  { %46 = dma.hbm_to_vmem [thread:$0]  %s938_s5, 4096, %s41_s16, [#allocation7], %s820_s1, %s820_s1, %s821_s25  }
  0x24   :  { %810 = dma.done.wait [#allocation4], 1024  }
  0x25   :  { %811 = vsyncadd [#allocation4], 4294966272 }
  0x26   :  { %812 = dma.done.wait [#allocation7], 4096  }
  0x27   :  { %813 = vsyncadd [#allocation7], 4294963200  ;;  %v822_v0 = vmov 0.0   ;;  %vm823_vm0 = vmmov 0   ;;  %v679_v1 = vld [vmem:[#allocation3] sm:$0xff]   ;;  %v680_v2 = vld [vmem:[#allocation3 + $0x8] sm:$0xff]  }
  0x28   :  { %649 = vmatprep.subr.bf16.mxu0 %v822_v0  ;;  %665 = vmatprep.mubr.msk.bf16.mxu0 %vm823_vm0, %v822_v0  ;;  %v681_v3 = vld [vmem:[#allocation3 + $0x10] sm:$0xff]   ;;  %v682_v4 = vld [vmem:[#allocation3 + $0x18] sm:$0xff]   ;;  %v683_v5 = vld [vmem:[#allocation3 + $0x20] sm:$0xff]  }
  0x29   :  { %650 = vmatpush3.bf16.msra.mxu0 %v679_v1  ;;  %v684_v6 = vld [vmem:[#allocation3 + $0x28] sm:$0xff]   ;;  %v685_v7 = vld [vmem:[#allocation3 + $0x30] sm:$0xff]   ;;  %v686_v8 = vld [vmem:[#allocation3 + $0x38] sm:$0xff]  }
  0x2a   :  { %651 = vmatprep.subr.bf16.mxu0 %v822_v0  ;;  %v687_v9 = vld [vmem:[%s933_s0] sm:$0xff]   ;;  %v688_v35 = vld [vmem:[#allocation6 + $0x4] ss:$16 sps:$4 sm:$0xff]   ;;  %v693_v38 = vld [vmem:[#allocation6] ss:$16 sps:$4 sm:$0xff]  }
  0x2b   :  { %v588_v10 = vld [vmem:[%s935_s2] ss:$0 sm:$0xff]  ;;  %v692_v37 = vld [vmem:[#allocation6 + $0xc] ss:$16 sps:$4 sm:$0xff]   ;;  %v694_v39 = vld [vmem:[#allocation6 + $0x24] ss:$16 sps:$4 sm:$0xff]   ;;  %456 = vmatprep.subr.bf16.mxu1 %v688_v35 }
  0x2c   :  { %v690_v36 = vld [vmem:[#allocation6 + $0x8] ss:$16 sps:$4 sm:$0xff]   ;;  %v698_v40 = vld [vmem:[#allocation6 + $0x2c] ss:$16 sps:$4 sm:$0xff]   ;;  %457 = vmatpush1.bf16.msra.mxu1 %v693_v38  ;;  %v699_v50 = vld [vmem:[#allocation6 + $0x20] ss:$16 sps:$4 sm:$0xff]  }
  0x2d   :  { %652 = vmatpush3.bf16.msra.mxu0 %v680_v2  ;;  %v696_v41 = vld [vmem:[#allocation6 + $0x28] ss:$16 sps:$4 sm:$0xff]   ;;  %458 = vmatprep.subr.bf16.mxu1 %v694_v39  ;;  %v700_v51 = vld [vmem:[#allocation6 + $0x44] ss:$16 sps:$4 sm:$0xff]   ;;  %v704_v52 = vld [vmem:[#allocation6 + $0x4c] ss:$16 sps:$4 sm:$0xff]  }
  0x2e   :  { %653 = vmatprep.subr.bf16.mxu0 %v822_v0  ;;  %v702_v53 = vld [vmem:[#allocation6 + $0x48] ss:$16 sps:$4 sm:$0xff]   ;;  %v705_v54 = vld [vmem:[#allocation6 + $0x40] ss:$16 sps:$4 sm:$0xff]   ;;  %v706_v55 = vld [vmem:[#allocation6 + $0x64] ss:$16 sps:$4 sm:$0xff]  }
  0x2f   :  { %v710_v56 = vld [vmem:[#allocation6 + $0x6c] ss:$16 sps:$4 sm:$0xff]   ;;  %v708_v57 = vld [vmem:[#allocation6 + $0x68] ss:$16 sps:$4 sm:$0xff]   ;;  %v711_v58 = vld [vmem:[#allocation6 + $0x60] ss:$16 sps:$4 sm:$0xff]  }
  0x30   :  { %459 = vmatpush1.bf16.msra.mxu1 %v699_v50  ;;  %v712_v59 = vld [vmem:[#allocation6 + $0x84] ss:$16 sps:$4 sm:$0xff]   ;;  %v714_v60 = vld [vmem:[#allocation6 + $0x88] ss:$16 sps:$4 sm:$0xff]   ;;  %v716_v61 = vld [vmem:[#allocation6 + $0x8c] ss:$16 sps:$4 sm:$0xff]  }
  0x31   :  { %654 = vmatpush3.bf16.msra.mxu0 %v681_v3  ;;  %460 = vmatprep.subr.bf16.mxu1 %v700_v51  ;;  %v717_v62 = vld [vmem:[#allocation6 + $0x80] ss:$16 sps:$4 sm:$0xff]   ;;  %v718_v63 = vld [vmem:[#allocation6 + $0xa4] ss:$16 sps:$4 sm:$0xff]   ;;  %v720_v1 = vld [vmem:[#allocation6 + $0xa8] ss:$16 sps:$4 sm:$0xff]  }
  0x32   :  { %655 = vmatprep.subr.bf16.mxu0 %v822_v0  ;;  %v723_v2 = vld [vmem:[#allocation6 + $0xa0] ss:$16 sps:$4 sm:$0xff]   ;;  %v724_v3 = vld [vmem:[#allocation6 + $0xc4] ss:$16 sps:$4 sm:$0xff]  }
  0x34   :  { %461 = vmatpush1.bf16.msra.mxu1 %v705_v54 }
  0x35   :  { %656 = vmatpush3.bf16.msra.mxu0 %v682_v4  ;;  %462 = vmatprep.subr.bf16.mxu1 %v706_v55  ;;  %v728_v4 = vld [vmem:[#allocation6 + $0xcc] ss:$16 sps:$4 sm:$0xff]  }
  0x36   :  { %657 = vmatprep.subr.bf16.mxu0 %v822_v0 }
  0x38   :  { %463 = vmatpush1.bf16.msra.mxu1 %v711_v58 }
  0x39   :  { %658 = vmatpush3.bf16.msra.mxu0 %v683_v5  ;;  %464 = vmatprep.subr.bf16.mxu1 %v712_v59  ;;  %v824_v5 = vmov 0  }
  0x3a   :  { %659 = vmatprep.subr.bf16.mxu0 %v822_v0  ;;  %488 = vmatprep.mubr.bf16.mxu1 %v824_v5 }
  0x3c   :  { %465 = vmatpush1.bf16.msra.mxu1 %v717_v62 }
  0x3d   :  { %660 = vmatpush3.bf16.msra.mxu0 %v684_v6  ;;  %466 = vmatprep.subr.bf16.mxu1 %v718_v63  ;;  %v726_v6 = vld [vmem:[#allocation6 + $0xc8] ss:$16 sps:$4 sm:$0xff]  }
  0x3e   :  { %661 = vmatprep.subr.bf16.mxu0 %v822_v0 }
  0x40   :  { %467 = vmatpush1.bf16.msra.mxu1 %v723_v2 }
  0x41   :  { %662 = vmatpush3.bf16.msra.mxu0 %v685_v7  ;;  %v729_v7 = vld [vmem:[#allocation6 + $0xc0] ss:$16 sps:$4 sm:$0xff]   ;;  %468 = vmatprep.subr.bf16.mxu1 %v724_v3 }
  0x42   :  { %663 = vmatprep.subr.bf16.mxu0 %v822_v0  ;;  %v722_v0 = vld [vmem:[#allocation6 + $0xac] ss:$16 sps:$4 sm:$0xff]  }
  0x44   :  { %469 = vmatpush1.bf16.msra.mxu1 %v729_v7 }
  0x45   :  { %664 = vmatpush3.bf16.msra.mxu0 %v686_v8  ;;  %v730_v8 = vld [vmem:[#allocation6 + $0xe4] ss:$16 sps:$4 sm:$0xff]  }
  0x46   :  { %499 = vmatprep.subr.bf16.mxu0 %v692_v37  ;;  %470 = vmatprep.subr.bf16.mxu1 %v730_v8 }
  0x48   :  { %666 = vmatmul.mubr.bf16.vlgmr.msra.gmra.mrb[0].mxu0 %v687_v9  ;;  %v734_v9 = vld [vmem:[#allocation6 + $0xec] ss:$16 sps:$4 sm:$0xff]  }
  0x49   :  { %500 = vmatpush1.bf16.msra.mxu0 %v690_v36  ;;  %531 = vmatprep.mubr.bf16.mxu0 %v824_v5 }
  0x4a   :  { %501 = vmatprep.subr.bf16.mxu0 %v698_v40 }
  0x4d   :  { %502 = vmatpush1.bf16.msra.mxu0 %v696_v41 }
  0x4e   :  { %503 = vmatprep.subr.bf16.mxu0 %v704_v52 }
  0x51   :  { %504 = vmatpush1.bf16.msra.mxu0 %v702_v53 }
  0x52   :  { %505 = vmatprep.subr.bf16.mxu0 %v710_v56 }
  0x55   :  { %506 = vmatpush1.bf16.msra.mxu0 %v708_v57 }
  0x56   :  { %507 = vmatprep.subr.bf16.mxu0 %v716_v61 }
  0x59   :  { %508 = vmatpush1.bf16.msra.mxu0 %v714_v60 }
  0x5a   :  { %509 = vmatprep.subr.bf16.mxu0 %v722_v0 }
  0x5d   :  { %510 = vmatpush1.bf16.msra.mxu0 %v720_v1 }
  0x5e   :  { %511 = vmatprep.subr.bf16.mxu0 %v728_v4 }
  0x61   :  { %512 = vmatpush1.bf16.msra.mxu0 %v726_v6 }
  0x62   :  { %513 = vmatprep.subr.bf16.mxu0 %v734_v9 }
 0x11b   :  { %v173_v11 = vpop.f32.mrb[0].mxu0 }
 0x11c   :  { %v174_v12 = vadd.f32 %v588_v10, %v173_v11  ;;  %v667_v13 = vpop.f32.mrb[1].mxu0  ;;  %v735_v11 = vld [vmem:[#allocation6 + $0xe0] ss:$16 sps:$4 sm:$0xff]  }
 0x11d   :  { %v176_v14 = vpop.f32.mrb[2].mxu0  ;;  %471 = vmatpush1.bf16.msra.mxu1 %v735_v11 }
 0x11e   :  { %v182_v15 = vmul.f32 0.044715, %v174_v12  ;;  %v177_v16 = vadd.f32 %v588_v10, %v176_v14  ;;  %v668_v17 = vpop.f32.mrb[3].mxu0  ;;  %v180_v28 = vmul.f32 0.5, %v174_v12  ;;  %v732_v10 = vld [vmem:[#allocation6 + $0xe8] ss:$16 sps:$4 sm:$0xff]  }
 0x11f   :  { %514 = vmatpush1.bf16.msra.mxu0 %v732_v10 }
 0x120   :  { %v183_v18 = vmul.f32 0.044715, %v177_v16  ;;  %v184_v19 = vmul.f32 %v182_v15, %v174_v12  ;;  %v181_v33 = vmul.f32 0.5, %v177_v16 }
 0x122   :  { %v186_v20 = vmul.f32 %v184_v19, %v174_v12  ;;  %v185_v21 = vmul.f32 %v183_v18, %v177_v16 }
 0x124   :  { %v188_v22 = vadd.f32 %v186_v20, %v174_v12  ;;  %v187_v23 = vmul.f32 %v185_v21, %v177_v16  ;;  %v598_v20 = vld [vmem:[%s936_s3] ss:$0 sm:$0xff] }
 0x126   :  { %v190_v24 = vmul.f32 0.7978846, %v188_v22  ;;  %v189_v25 = vadd.f32 %v187_v23, %v177_v16 }
 0x128   :  { %736 = vtanh.f32 %v190_v24  ;;  %v191_v26 = vmul.f32 0.7978846, %v189_v25  ;;  %v599_v24 = vld [vmem:[%s937_s4] ss:$0 sm:$0xff]  ;;  %s825_s4 = smov [#allocation8]  }
 0x12a   :  { %738 = vtanh.f32 %v191_v26 }
 0x132   :  { %v737_v27 = vpop.eup %736 }
 0x133   :  { %v194_v29 = vadd.f32 1.0, %v737_v27 }
 0x134   :  { %v739_v30 = vpop.eup %738 }
 0x135   :  { %v196_v31 = vmul.f32 %v194_v29, %v180_v28  ;;  %v195_v32 = vadd.f32 1.0, %v739_v30  ;;  %v276_v29 = vlaneseq }
 0x137   :  { %198 = vadd.xlane.f32.xlu0 %v196_v31  ;;  %v197_v34 = vmul.f32 %v195_v32, %v181_v33  ;;  %v277_v30 = vshrl.u32 %v276_v29, 7  ;;  %v274_v33 = vld [vmem:[%s939_s6] sm:$0xf]  ;;  %s575_s6 = sshll.u32 %s825_s4, 4  ;;  %s576_s6 = int_to_ptr.vmem [resolvable:$true] %s575_s6 }
 0x138   :  { %s788_s11 = scalar_lea.vmem %s576_s6, 512  ;;  %p793_p3 = scmp.lt.s32.totalorder %s576_s6, %s576_s6 }
 0x139   :  { %v286_v32 = vsub.s32 2, %v277_v30  ;;  %v290_v35 = vsub.s32 3, %v277_v30  ;;  %p789_p2 = scmp.ne.s32.totalorder %s576_s6, %s788_s11  ;;  %p794_p4 = scmp.lt.s32.totalorder %s788_s11, %s788_s11 }
 0x13b   :  { %200 = vadd.xlane.f32.xlu0 %v197_v34  ;;  %v287_v37 = vrot.slane %v274_v33, %v286_v32  ;;  %v291_v39 = vrot.slane %v274_v33, %v290_v35  ;;  %p795_p5 = por %p794_p4, %p793_p3 }
 0x13d   :  { %p796_p6 = pnand %p795_p5, %p789_p2 }
 0x1c4   :  { %v199_v42 = vpop.xlane.xlu0 %198 }
 0x1c5   :  { %v203_v43 = vmul.f32 0.0078125, %v199_v42 }
 0x1c7   :  { %v899_v44 = vsub.f32 %v196_v31, %v203_v43  ;;  %v278_v31 = vsub.s32 0, %v277_v30 }
 0x1c8   :  { %v201_v45 = vpop.xlane.xlu0 %200 }
 0x1c9   :  { %v204_v46 = vmul.f32 0.0078125, %v201_v45  ;;  %v207_v47 = vmul.f32 %v899_v44, %v899_v44  ;;  %v279_v36 = vrot.slane %v274_v33, %v278_v31 }
 0x1cb   :  { %v903_v48 = vsub.f32 %v197_v34, %v204_v46  ;;  %209 = vadd.xlane.f32.xlu1 %v207_v47  ;;  %v282_v34 = vsub.s32 1, %v277_v30 }
 0x1cd   :  { %v208_v49 = vmul.f32 %v903_v48, %v903_v48  ;;  %v283_v38 = vrot.slane %v274_v33, %v282_v34 }
 0x1cf   :  { %211 = vadd.xlane.f32.xlu1 %v208_v49 }
 0x258   :  { %v210_v12 = vpop.xlane.xlu1 %209 }
 0x259   :  { %v213_v13 = vmul.f32 0.0078125, %v210_v12 }
 0x25b   :  { %v215_v14 = vadd.f32 1e-12, %v213_v13 }
 0x25c   :  { %v212_v15 = vpop.xlane.xlu1 %211 }
 0x25d   :  { %740 = vrsqrt.f32 %v215_v14  ;;  %v214_v16 = vmul.f32 0.0078125, %v212_v15 }
 0x25f   :  { %v216_v17 = vadd.f32 1e-12, %v214_v16 }
 0x261   :  { %742 = vrsqrt.f32 %v216_v17 }
 0x267   :  { %v741_v18 = vpop.eup %740 }
 0x268   :  { %v219_v19 = vmul.f32 %v741_v18, %v899_v44 }
 0x26a   :  { %v228_v23 = vmul.f32 %v598_v20, %v219_v19 }
 0x26b   :  { %v743_v21 = vpop.eup %742 }
 0x26c   :  { %v220_v22 = vmul.f32 %v743_v21, %v903_v48  ;;  %v237_v26 = vadd.f32 %v599_v24, %v228_v23 }
 0x26e   :  { %v229_v25 = vmul.f32 %v598_v20, %v220_v22 }
 0x270   :  { %v238_v27 = vadd.f32 %v599_v24, %v229_v25 }
 0x272   :  { %v239_v28 = vpack.c.bf16 %v238_v27, %v237_v26 }
 0x274   :  { %489 = vmatmul.mubr.bf16.vlgmr.msra.gmra.mrb[0].mxu1 %v239_v28  ;;  %532 = vmatmul.mubr.bf16.vlgmr.msra.gmra.mrb[4].mxu0 %v239_v28 }
 0x347   :  { %v490_v40 = vpop.f32.mrb[0].mxu1  ;;  %v533_v41 = vpop.f32.mrb[4].mxu0 }
 0x348   :  { %v491_v42 = vadd.f32 %v490_v40, %v279_v36  ;;  %v534_v43 = vadd.f32 %v533_v41, %v287_v37  ;;  %v492_v44 = vpop.f32.mrb[1].mxu1  ;;  %v535_v45 = vpop.f32.mrb[5].mxu0 }
 0x349   :  { %v493_v46 = vadd.f32 %v492_v44, %v283_v38  ;;  %v536_v47 = vadd.f32 %v535_v45, %v291_v39  ;;  %v494_v48 = vpop.f32.mrb[2].mxu1  ;;  %v537_v49 = vpop.f32.mrb[6].mxu0 }
 0x34a   :  { %v495_v50 = vadd.f32 %v494_v48, %v279_v36  ;;  %v538_v51 = vadd.f32 %v537_v49, %v287_v37  ;;  %v496_v52 = vpop.f32.mrb[3].mxu1  ;;  %v539_v53 = vpop.f32.mrb[7].mxu0 }
 0x34b   :  { %v636_v54 = vpack.c.bf16 %v493_v46, %v491_v42  ;;  %v637_v55 = vpack.c.bf16 %v536_v47, %v534_v43  ;;  %v497_v56 = vadd.f32 %v496_v52, %v283_v38  ;;  %v540_v57 = vadd.f32 %v539_v53, %v291_v39 }
 0x34d   :  { %566 = vst [vmem:[#allocation8] sm:$0xff] %v636_v54  ;;  %567 = vst [vmem:[#allocation8 + $0x8] sm:$0xff] %v637_v55  ;;  %v638_v58 = vpack.c.bf16 %v497_v56, %v495_v50  ;;  %v639_v59 = vpack.c.bf16 %v540_v57, %v538_v51 }
 0x34f   :  { %568 = vst [vmem:[#allocation8 + $0x10] sm:$0xff] %v638_v58  ;;  %569 = vst [vmem:[#allocation8 + $0x18] sm:$0xff] %v639_v59 }
 0x350   :  { %799 = shalt.err (!%p796_p6)
}
 0x351   :  { %s800_s14 = scalar_lea.hbm %s940_s7, 512 }
 0x352   :  { %p801_p7 = scmp.ne.s32.totalorder %s940_s7, %s800_s14  ;;  %p804_p8 = scmp.lt.u32.totalorder %s800_s14, %s940_s7 }
 0x354   :  { %p806_p9 = pnand %p804_p8, %p801_p7 }
 0x356   :  { %809 = shalt.err (!%p806_p9)
}
 0x357   :  { %581 = dma.vmem_to_hbm [thread:$0]  %s576_s6, 512, %s940_s7, [#allocation5], %s820_s1, %s820_s1, %s821_s25  }
 0x358   :  { %814 = dma.done.wait [#allocation5], 512  }
 0x359   :  { %815 = vsyncadd [#allocation5], 4294966784 }
 0x35a   :  { %585 = vsyncpa [#allocation4], 1 }
 0x35b   :  { %586 = vsyncpa [#allocation7], 1 }
 0x35c   :  { %587 = vsyncpa [#allocation5], 1 }

</bundles_post_ra>
